<compile_context>
chip_gen: v7x
topology: tpu7x:2x2x1
jax: 0.10.0
libtpu: 0.0.40
codegen_flags: <defaults>
</compile_context>

<pallas_src>
import functools

import jax
import jax.numpy as jnp
from jax.experimental import pallas as pl
from jax.experimental.pallas import tpu as pltpu


def _round_up(v, m):
    return ((v + m - 1) // m) * m


def _pick_tile(n, cap, align):
    """Largest tile <= cap that divides n and is `align`-aligned; else full n."""
    if n <= cap:
        return n
    t = (cap // align) * align
    while t >= align:
        if n % t == 0:
            return t
        t -= align
    return n


# ----------------------------------------------------------------------------
# Kernel 1: node information score with fused symmetric normalization.
#   s_i = sum_f | x_i - dinv_i * sum_j adj_ij * dinv_j * x_j |
# Grid (row tiles, col tiles) with the reduction (col) axis last.
# ----------------------------------------------------------------------------
def _info_score_kernel(adj_ref, xk_ref, xi_ref, di_ref, dk_ref, s_ref, acc_ref):
    k = pl.program_id(1)

    @pl.when(k == 0)
    def _init():
        acc_ref[...] = jnp.zeros_like(acc_ref)

    # Column-scale x by dinv_j, feed the MXU bf16 inputs, accumulate in f32.
    xs = (xk_ref[...] * dk_ref[...]).astype(jnp.bfloat16)            # (TK, F)
    acc_ref[...] += jnp.dot(adj_ref[...], xs,
                            preferred_element_type=jnp.float32)       # (TM, F)

    @pl.when(k == pl.num_programs(1) - 1)
    def _finalize():
        ax = acc_ref[...] * di_ref[...]                                # row scale
        s_ref[...] = jnp.sum(jnp.abs(xi_ref[...] - ax), axis=1, keepdims=True)


def info_score(adj_bf16, x_pad, dinv):
    n = adj_bf16.shape[0]
    f_pad = x_pad.shape[1]
    tm = _pick_tile(n, 256, 8)      # keep adjacency tiles small enough for
    tk = _pick_tile(n, 512, 128)    # v7x's 64 MiB VMEM with double buffering
    dinv2 = dinv.reshape(n, 1).astype(jnp.float32)

    cost = pl.CostEstimate(
        flops=2 * n * n * f_pad,
        transcendentals=0,
        bytes_accessed=n * n * 2 + 2 * n * f_pad * 4 + 2 * n * 4 + n * 4,
    )
    # TODO(synk): if the adjacency DMA is still exposed on v7x, raise pipeline
    # depth on the adj BlockSpec with pipeline_mode=pl.Buffered(3).
    out = pl.pallas_call(
        _info_score_kernel,
        out_shape=jax.ShapeDtypeStruct((n, 1), jnp.float32),
        grid_spec=pltpu.PrefetchScalarGridSpec(
            num_scalar_prefetch=0,
            grid=(n // tm, n // tk),
            in_specs=[
                pl.BlockSpec((tm, tk), lambda i, k: (i, k)),      # adj tile (bf16)
                pl.BlockSpec((tk, f_pad), lambda i, k: (k, 0)),   # x col block
                pl.BlockSpec((tm, f_pad), lambda i, k: (i, 0)),   # x row block
                pl.BlockSpec((tm, 1), lambda i, k: (i, 0)),       # dinv row
                pl.BlockSpec((tk, 1), lambda i, k: (k, 0)),       # dinv col
            ],
            out_specs=pl.BlockSpec((tm, 1), lambda i, k: (i, 0)),
            scratch_shapes=[pltpu.VMEM((tm, f_pad), jnp.float32)],
        ),
        compiler_params=pltpu.CompilerParams(
            dimension_semantics=("parallel", "arbitrary"),
            vmem_limit_bytes=32 * 1024 * 1024,
        ),
        cost_estimate=cost,
    )(adj_bf16, x_pad, x_pad, dinv2, dinv2)
    return out.reshape(n)


# ----------------------------------------------------------------------------
# Kernel 2: fused readout for all 3 pools + relu-sum accumulation.
#   For each pool p: max_p = masked max, mean_p = masked mean over active nodes
#   Outputs: sum_p relu(max_p)  and  sum_p relu(mean_p)   (each (G, F_pad))
# x stays resident in VMEM across the pool grid (loaded from HBM once).
# ----------------------------------------------------------------------------
def _readout_kernel(memb_ref, x_ref, omax_ref, omean_ref):
    p = pl.program_id(0)

    @pl.when(p == 0)
    def _init():
        omax_ref[...] = jnp.zeros_like(omax_ref)
        omean_ref[...] = jnp.zeros_like(omean_ref)

    memb = memb_ref[...]                                              # (G, N) 0/1
    x = x_ref[...]                                                    # (N, F)

    # mean pool: masked sum via MXU matmul, guarded divide.
    ssum = jnp.dot(memb, x, preferred_element_type=jnp.float32)       # (G, F)
    cnt = jnp.sum(memb, axis=1, keepdims=True)                        # (G, 1)
    mean = ssum / jnp.maximum(cnt, 1.0)

    # max pool: vectorized masked max (one sublane reduction, no per-graph loop)
    # TODO(synk): for very large N, tile over nodes with a running max instead
    # of the (G, N, F) broadcast.
    neg = jnp.float32(-3.0e38)
    masked = jnp.where(memb[:, :, None] > 0.0, x[None, :, :], neg)    # (G, N, F)
    mx = jnp.max(masked, axis=1)                                      # (G, F)
    mx = jnp.where(cnt > 0.0, mx, 0.0)                                # empty graph -> 0

    zero = jnp.float32(0.0)
    omax_ref[...] += jnp.maximum(mx, zero)
    omean_ref[...] += jnp.maximum(mean, zero)


def readout_relu_sum(memb_stack, x_pad):
    p_pools, g, n = memb_stack.shape
    f_pad = x_pad.shape[1]
    return pl.pallas_call(
        _readout_kernel,
        out_shape=(jax.ShapeDtypeStruct((g, f_pad), jnp.float32),
                   jax.ShapeDtypeStruct((g, f_pad), jnp.float32)),
        grid_spec=pltpu.PrefetchScalarGridSpec(
            num_scalar_prefetch=0,
            grid=(p_pools,),
            in_specs=[
                pl.BlockSpec((None, g, n), lambda p: (p, 0, 0)),   # memb of pool p
                pl.BlockSpec((n, f_pad), lambda p: (0, 0)),        # x (resident)
            ],
            out_specs=(pl.BlockSpec((g, f_pad), lambda p: (0, 0)),
                       pl.BlockSpec((g, f_pad), lambda p: (0, 0))),
        ),
        compiler_params=pltpu.CompilerParams(
            dimension_semantics=("arbitrary",),
            vmem_limit_bytes=32 * 1024 * 1024,
        ),
    )(memb_stack.astype(jnp.float32), x_pad)


# ----------------------------------------------------------------------------
# JAX glue: per-graph top-k (k = ceil(ratio * n_active)) via a single stable
# sort (O(N log N)); replaces the old dense N x N rank comparison.
# TODO(synk): top-k node selection is data-dependent gather-style work and is
# kept in plain JAX rather than inside a Pallas kernel.
# ----------------------------------------------------------------------------
def topk_keep(score, batch, active, ratio, num_graphs):
    n = score.shape[0]
    onehot = jax.nn.one_hot(batch, num_graphs, dtype=jnp.float32)      # (N, G)
    counts_all = jnp.sum(onehot, axis=0).astype(jnp.int32)             # (G,)
    counts_active = jnp.sum(onehot * active.astype(jnp.float32)[:, None], axis=0)
    k = jnp.ceil(ratio * counts_active).astype(jnp.int32)              # (G,)

    idx = jnp.arange(n, dtype=jnp.int32)
    eff = jnp.where(active, score, -jnp.inf)                           # inactive last
    # sort by (graph id asc, score desc); stable -> ties broken by index asc
    sorted_batch, _, order = jax.lax.sort(
        (batch.astype(jnp.int32), -eff, idx), num_keys=2, is_stable=True)
    starts = jnp.cumsum(counts_all) - counts_all                       # (G,)
    rank_sorted = idx - starts[sorted_batch]                           # pos within graph
    rank = jnp.zeros((n,), jnp.int32).at[order].set(rank_sorted)
    return active & (rank < k[batch])


# ----------------------------------------------------------------------------
# GPModel forward: 3 x HGPSLPool(sl=False) + readout + relu-sum.
# (HGPSLPool's `att` parameter is unused in forward when sl=False.)
# ----------------------------------------------------------------------------
@functools.partial(jax.jit, static_argnames=("num_graphs", "pooling_ratio"))
def gp_model_forward(x, adj, batch, *, num_graphs, pooling_ratio=0.5):
    n, f = x.shape
    f_pad = _round_up(f, 128)                          # lane-dense feature axis
    x_pad = jnp.pad(x.astype(jnp.float32), ((0, 0), (0, f_pad - f)))
    adj_bf16 = adj.astype(jnp.bfloat16)                # 0/1 values: bf16-exact
    onehot_gn = jax.nn.one_hot(batch, num_graphs, dtype=jnp.float32).T  # (G, N)

    active = jnp.ones((n,), dtype=bool)
    membs = []
    for _ in range(3):  # pool1, pool2, pool3
        maskf = active.astype(jnp.float32)
        # masked degrees (exact: 0/1 products accumulated in f32)
        deg = maskf * jnp.dot(adj_bf16, maskf.astype(jnp.bfloat16),
                              preferred_element_type=jnp.float32)
        dinv = jnp.where(deg > 0.0, jax.lax.rsqrt(jnp.maximum(deg, 1.0)), 0.0)
        score = info_score(adj_bf16, x_pad, dinv)                  # Pallas kernel
        active = topk_keep(score, batch, active, pooling_ratio, num_graphs)
        membs.append(onehot_gn * active.astype(jnp.float32)[None, :])

    memb_stack = jnp.stack(membs, axis=0)                          # (3, G, N)
    out_max, out_mean = readout_relu_sum(memb_stack, x_pad)        # Pallas kernel
    # relu/sum commute with the max|mean concatenation -> assemble [G, 2F]
    return jnp.concatenate([out_max[:, :f], out_mean[:, :f]], axis=1)


if __name__ == "__main__":
    # Small deterministic problem: 2 graphs, 16 nodes each, 16 features.
    N, F, G = 32, 16, 2
    POOLING_RATIO = 0.5

    key = jax.random.PRNGKey(0)
    k_x, k_e = jax.random.split(key, 2)

    x = jax.random.normal(k_x, (N, F), dtype=jnp.float32)
    batch = jnp.concatenate([jnp.zeros(N // 2, jnp.int32),
                             jnp.ones(N // 2, jnp.int32)])

    # Random undirected intra-graph edges, no self loops.
    rand = jax.random.uniform(k_e, (N, N))
    same_graph = batch[:, None] == batch[None, :]
    upper = jnp.triu(jnp.ones((N, N), dtype=bool), k=1)
    a_up = (rand < 0.3) & upper & same_graph
    adj = (a_up | a_up.T).astype(jnp.float32)

    out = gp_model_forward(x, adj, batch,
                           num_graphs=G, pooling_ratio=POOLING_RATIO)
    out = jax.block_until_ready(out)
    assert out.shape == (G, 2 * F), out.shape
    assert bool(jnp.all(jnp.isfinite(out)))
    print("KERNEL_OK")
</pallas_src>

<mosaic_0001>
module attributes {stable_mosaic.version = 11 : i64} {
  func.func @_info_score_kernel(%arg0: i32, %arg1: i32, %arg2: memref<32x32xbf16, #tpu.memory_space<vmem>>, %arg3: memref<32x128xf32, #tpu.memory_space<vmem>>, %arg4: memref<32x128xf32, #tpu.memory_space<vmem>>, %arg5: memref<32x1xf32, #tpu.memory_space<vmem>>, %arg6: memref<32x1xf32, #tpu.memory_space<vmem>>, %arg7: memref<32x1xf32, #tpu.memory_space<vmem>>, %arg8: memref<32x128xf32, #tpu.memory_space<vmem>>) attributes {dimension_semantics = [#tpu.dimension_semantics<parallel>, #tpu.dimension_semantics<arbitrary>], iteration_bounds = array<i64: 1, 1>, scalar_prefetch = 0 : i64, scratch_operands = 1 : i64, tpu.core_type = #tpu.core_type<tc>, window_params = [{transform_indices = @transform_0, window_bounds = array<i64: 32, 32>}, {transform_indices = @transform_1, window_bounds = array<i64: 32, 128>}, {transform_indices = @transform_2, window_bounds = array<i64: 32, 128>}, {transform_indices = @transform_3, window_bounds = array<i64: 32, 1>}, {transform_indices = @transform_4, window_bounds = array<i64: 32, 1>}, {transform_indices = @transform_5, window_bounds = array<i64: 32, 1>}]} {
    %c0_i32 = arith.constant 0 : i32
    %0 = arith.cmpi eq, %arg1, %c0_i32 : i32
    %1 = arith.extui %0 : i1 to i32
    %c0_i32_0 = arith.constant 0 : i32
    %2 = arith.cmpi ne, %1, %c0_i32_0 : i32
    scf.if %2 {
      %cst_12 = arith.constant 0.000000e+00 : f32
      %16 = vector.broadcast %cst_12 : f32 to vector<32x128xf32>
      %c0_13 = arith.constant 0 : index
      %c0_14 = arith.constant 0 : index
      %17 = vector.load %arg8[%c0_13, %c0_14] : memref<32x128xf32, #tpu.memory_space<vmem>>, vector<32x128xf32>
      tpu.vector_store %arg8[%c0_13, %c0_14], %16 {strides = array<i32>} : memref<32x128xf32, #tpu.memory_space<vmem>>, vector<32x128xf32>,
    } else {
    }
    %c0 = arith.constant 0 : index
    %c0_1 = arith.constant 0 : index
    %3 = vector.load %arg3[%c0, %c0_1] : memref<32x128xf32, #tpu.memory_space<vmem>>, vector<32x128xf32>
    %c0_2 = arith.constant 0 : index
    %c0_3 = arith.constant 0 : index
    %4 = vector.load %arg6[%c0_2, %c0_3] : memref<32x1xf32, #tpu.memory_space<vmem>>, vector<32x1xf32>
    %5 = vector.broadcast %4 : vector<32x1xf32> to vector<32x128xf32>
    %6 = arith.mulf %3, %5 : vector<32x128xf32>
    %7 = arith.truncf %6 : vector<32x128xf32> to vector<32x128xbf16>
    %c0_4 = arith.constant 0 : index
    %c0_5 = arith.constant 0 : index
    %8 = vector.load %arg8[%c0_4, %c0_5] : memref<32x128xf32, #tpu.memory_space<vmem>>, vector<32x128xf32>
    %c0_6 = arith.constant 0 : index
    %c0_7 = arith.constant 0 : index
    %9 = vector.load %arg2[%c0_6, %c0_7] : memref<32x32xbf16, #tpu.memory_space<vmem>>, vector<32x32xbf16>
    %cst = arith.constant dense<0.000000e+00> : vector<32x128xf32>
    %10 = tpu.matmul %9, %7, %cst {dimension_numbers = #tpu.dot_dimension_numbers<[1], [0], [0], [1], [0, 0, 1, 1], [], []>} : vector<32x32xbf16>, vector<32x128xbf16>, vector<32x128xf32> -> vector<32x128xf32>
    %11 = arith.addf %8, %10 : vector<32x128xf32>
    %c0_8 = arith.constant 0 : index
    %c0_9 = arith.constant 0 : index
    %12 = vector.load %arg8[%c0_8, %c0_9] : memref<32x128xf32, #tpu.memory_space<vmem>>, vector<32x128xf32>
    tpu.vector_store %arg8[%c0_8, %c0_9], %11 {strides = array<i32>} : memref<32x128xf32, #tpu.memory_space<vmem>>, vector<32x128xf32>,
    %c0_i32_10 = arith.constant 0 : i32
    %13 = arith.cmpi eq, %arg1, %c0_i32_10 : i32
    %14 = arith.extui %13 : i1 to i32
    %c0_i32_11 = arith.constant 0 : i32
    %15 = arith.cmpi ne, %14, %c0_i32_11 : i32
    scf.if %15 {
      %c0_12 = arith.constant 0 : index
      %c0_13 = arith.constant 0 : index
      %16 = vector.load %arg8[%c0_12, %c0_13] : memref<32x128xf32, #tpu.memory_space<vmem>>, vector<32x128xf32>
      %c0_14 = arith.constant 0 : index
      %c0_15 = arith.constant 0 : index
      %17 = vector.load %arg5[%c0_14, %c0_15] : memref<32x1xf32, #tpu.memory_space<vmem>>, vector<32x1xf32>
      %18 = vector.broadcast %17 : vector<32x1xf32> to vector<32x128xf32>
      %19 = arith.mulf %16, %18 : vector<32x128xf32>
      %c0_16 = arith.constant 0 : index
      %c0_17 = arith.constant 0 : index
      %20 = vector.load %arg4[%c0_16, %c0_17] : memref<32x128xf32, #tpu.memory_space<vmem>>, vector<32x128xf32>
      %21 = arith.subf %20, %19 : vector<32x128xf32>
      %22 = math.absf %21 : vector<32x128xf32>
      %cst_18 = arith.constant dense<0.000000e+00> : vector<32xf32>
      %23 = vector.multi_reduction <add>, %22, %cst_18 [1] : vector<32x128xf32> to vector<32xf32>
      %24 = vector.shape_cast %23 : vector<32xf32> to vector<32x1xf32>
      %c0_19 = arith.constant 0 : index
      %c0_20 = arith.constant 0 : index
      %25 = vector.load %arg7[%c0_19, %c0_20] : memref<32x1xf32, #tpu.memory_space<vmem>>, vector<32x1xf32>
      tpu.vector_store %arg7[%c0_19, %c0_20], %24 {strides = array<i32>} : memref<32x1xf32, #tpu.memory_space<vmem>>, vector<32x1xf32>,
    } else {
    }
    return
  }
  func.func @transform_0(%arg0: i32, %arg1: i32) -> (i32, i32) {
    %c0_i32 = arith.constant 0 : i32
    return %arg0, %arg1 : i32, i32
  }
  func.func @transform_1(%arg0: i32, %arg1: i32) -> (i32, i32) {
    %c0_i32 = arith.constant 0 : i32
    %c0_i32_0 = arith.constant 0 : i32
    return %arg1, %c0_i32 : i32, i32
  }
  func.func @transform_2(%arg0: i32, %arg1: i32) -> (i32, i32) {
    %c0_i32 = arith.constant 0 : i32
    %c0_i32_0 = arith.constant 0 : i32
    return %arg0, %c0_i32 : i32, i32
  }
  func.func @transform_3(%arg0: i32, %arg1: i32) -> (i32, i32) {
    %c0_i32 = arith.constant 0 : i32
    %c0_i32_0 = arith.constant 0 : i32
    return %arg0, %c0_i32 : i32, i32
  }
  func.func @transform_4(%arg0: i32, %arg1: i32) -> (i32, i32) {
    %c0_i32 = arith.constant 0 : i32
    %c0_i32_0 = arith.constant 0 : i32
    return %arg1, %c0_i32 : i32, i32
  }
  func.func @transform_5(%arg0: i32, %arg1: i32) -> (i32, i32) {
    %c0_i32 = arith.constant 0 : i32
    %c0_i32_0 = arith.constant 0 : i32
    return %arg0, %c0_i32 : i32, i32
  }
}

module attributes {stable_mosaic.version = 11 : i64} {
  func.func @_readout_kernel(%arg0: i32, %arg1: memref<1x2x32xf32, #tpu.memory_space<vmem>>, %arg2: memref<32x128xf32, #tpu.memory_space<vmem>>, %arg3: memref<2x128xf32, #tpu.memory_space<vmem>>, %arg4: memref<2x128xf32, #tpu.memory_space<vmem>>) attributes {dimension_semantics = [#tpu.dimension_semantics<arbitrary>], iteration_bounds = array<i64: 3>, scalar_prefetch = 0 : i64, scratch_operands = 0 : i64, tpu.core_type = #tpu.core_type<tc>, window_params = [{transform_indices = @transform_0, window_bounds = array<i64: 1, 2, 32>}, {pipeline_mode = #tpu.pipeline_mode<synchronous>, transform_indices = @transform_1, window_bounds = array<i64: 32, 128>}, {pipeline_mode = #tpu.pipeline_mode<synchronous>, transform_indices = @transform_2, window_bounds = array<i64: 2, 128>}, {pipeline_mode = #tpu.pipeline_mode<synchronous>, transform_indices = @transform_3, window_bounds = array<i64: 2, 128>}]} {
    %c0_i32 = arith.constant 0 : i32
    %0 = arith.cmpi eq, %arg0, %c0_i32 : i32
    %1 = arith.extui %0 : i1 to i32
    %c0_i32_0 = arith.constant 0 : i32
    %2 = arith.cmpi ne, %1, %c0_i32_0 : i32
    scf.if %2 {
      %cst_22 = arith.constant 0.000000e+00 : f32
      %40 = vector.broadcast %cst_22 : f32 to vector<2x128xf32>
      %c0_23 = arith.constant 0 : index
      %c0_24 = arith.constant 0 : index
      %41 = vector.load %arg3[%c0_23, %c0_24] : memref<2x128xf32, #tpu.memory_space<vmem>>, vector<2x128xf32>
      tpu.vector_store %arg3[%c0_23, %c0_24], %40 {strides = array<i32>} : memref<2x128xf32, #tpu.memory_space<vmem>>, vector<2x128xf32>,
      %cst_25 = arith.constant 0.000000e+00 : f32
      %42 = vector.broadcast %cst_25 : f32 to vector<2x128xf32>
      %c0_26 = arith.constant 0 : index
      %c0_27 = arith.constant 0 : index
      %43 = vector.load %arg4[%c0_26, %c0_27] : memref<2x128xf32, #tpu.memory_space<vmem>>, vector<2x128xf32>
      tpu.vector_store %arg4[%c0_26, %c0_27], %42 {strides = array<i32>} : memref<2x128xf32, #tpu.memory_space<vmem>>, vector<2x128xf32>,
    } else {
    }
    %c0 = arith.constant 0 : index
    %c0_1 = arith.constant 0 : index
    %c0_2 = arith.constant 0 : index
    %3 = vector.load %arg1[%c0, %c0_1, %c0_2] : memref<1x2x32xf32, #tpu.memory_space<vmem>>, vector<1x2x32xf32>
    %4 = vector.shape_cast %3 : vector<1x2x32xf32> to vector<2x32xf32>
    %c0_3 = arith.constant 0 : index
    %c0_4 = arith.constant 0 : index
    %5 = vector.load %arg2[%c0_3, %c0_4] : memref<32x128xf32, #tpu.memory_space<vmem>>, vector<32x128xf32>
    %cst = arith.constant dense<0.000000e+00> : vector<2x128xf32>
    %6 = tpu.matmul %4, %5, %cst {dimension_numbers = #tpu.dot_dimension_numbers<[1], [0], [0], [1], [0, 0, 1, 1], [], []>} : vector<2x32xf32>, vector<32x128xf32>, vector<2x128xf32> -> vector<2x128xf32>
    %cst_5 = arith.constant dense<0.000000e+00> : vector<2xf32>
    %7 = vector.multi_reduction <add>, %4, %cst_5 [1] : vector<2x32xf32> to vector<2xf32>
    %8 = vector.shape_cast %7 : vector<2xf32> to vector<2x1xf32>
    %cst_6 = arith.constant 1.000000e+00 : f32
    %9 = vector.broadcast %cst_6 : f32 to vector<2x1xf32>
    %10 = arith.maximumf %8, %9 : vector<2x1xf32>
    %11 = vector.broadcast %10 : vector<2x1xf32> to vector<2x128xf32>
    %12 = arith.divf %6, %11 : vector<2x128xf32>
    %13 = vector.shape_cast %4 : vector<2x32xf32> to vector<2x32x1xf32>
    %cst_7 = arith.constant 0.000000e+00 : f32
    %14 = vector.broadcast %cst_7 : f32 to vector<2x32x1xf32>
    %15 = arith.cmpf ogt, %13, %14 : vector<2x32x1xf32>
    %16 = vector.shape_cast %5 : vector<32x128xf32> to vector<1x32x128xf32>
    %cst_8 = arith.constant -3.000000e+38 : f32
    %17 = vector.shape_cast %15 : vector<2x32x1xi1> to vector<2x32x1xi1>
    %18 = vector.broadcast %17 : vector<2x32x1xi1> to vector<2x32x128xi1>
    %19 = vector.shape_cast %16 : vector<1x32x128xf32> to vector<1x32x128xf32>
    %20 = vector.broadcast %19 : vector<1x32x128xf32> to vector<2x32x128xf32>
    %21 = vector.broadcast %cst_8 : f32 to vector<2x32x128xf32>
    %22 = arith.select %18, %20, %21 : vector<2x32x128xi1>, vector<2x32x128xf32>
    %cst_9 = arith.constant dense<0xFF800000> : vector<2x128xf32>
    %23 = vector.multi_reduction <maximumf>, %22, %cst_9 [1] : vector<2x32x128xf32> to vector<2x128xf32>
    %cst_10 = arith.constant 0.000000e+00 : f32
    %24 = vector.broadcast %cst_10 : f32 to vector<2x1xf32>
    %25 = arith.cmpf ogt, %8, %24 : vector<2x1xf32>
    %cst_11 = arith.constant 0.000000e+00 : f32
    %26 = vector.shape_cast %25 : vector<2x1xi1> to vector<2x1xi1>
    %27 = vector.broadcast %26 : vector<2x1xi1> to vector<2x128xi1>
    %28 = vector.broadcast %cst_11 : f32 to vector<2x128xf32>
    %29 = arith.select %27, %23, %28 : vector<2x128xi1>, vector<2x128xf32>
    %c0_12 = arith.constant 0 : index
    %c0_13 = arith.constant 0 : index
    %30 = vector.load %arg3[%c0_12, %c0_13] : memref<2x128xf32, #tpu.memory_space<vmem>>, vector<2x128xf32>
    %cst_14 = arith.constant 0.000000e+00 : f32
    %31 = vector.broadcast %cst_14 : f32 to vector<2x128xf32>
    %32 = arith.maximumf %29, %31 : vector<2x128xf32>
    %33 = arith.addf %30, %32 : vector<2x128xf32>
    %c0_15 = arith.constant 0 : index
    %c0_16 = arith.constant 0 : index
    %34 = vector.load %arg3[%c0_15, %c0_16] : memref<2x128xf32, #tpu.memory_space<vmem>>, vector<2x128xf32>
    tpu.vector_store %arg3[%c0_15, %c0_16], %33 {strides = array<i32>} : memref<2x128xf32, #tpu.memory_space<vmem>>, vector<2x128xf32>,
    %c0_17 = arith.constant 0 : index
    %c0_18 = arith.constant 0 : index
    %35 = vector.load %arg4[%c0_17, %c0_18] : memref<2x128xf32, #tpu.memory_space<vmem>>, vector<2x128xf32>
    %cst_19 = arith.constant 0.000000e+00 : f32
    %36 = vector.broadcast %cst_19 : f32 to vector<2x128xf32>
    %37 = arith.maximumf %12, %36 : vector<2x128xf32>
    %38 = arith.addf %35, %37 : vector<2x128xf32>
    %c0_20 = arith.constant 0 : index
    %c0_21 = arith.constant 0 : index
    %39 = vector.load %arg4[%c0_20, %c0_21] : memref<2x128xf32, #tpu.memory_space<vmem>>, vector<2x128xf32>
    tpu.vector_store %arg4[%c0_20, %c0_21], %38 {strides = array<i32>} : memref<2x128xf32, #tpu.memory_space<vmem>>, vector<2x128xf32>,
    return
  }
  func.func @transform_0(%arg0: i32) -> (i32, i32, i32) {
    %c0_i32 = arith.constant 0 : i32
    %c0_i32_0 = arith.constant 0 : i32
    %c0_i32_1 = arith.constant 0 : i32
    return %arg0, %c0_i32, %c0_i32_0 : i32, i32, i32
  }
  func.func @transform_1(%arg0: i32) -> (i32, i32) {
    %c0_i32 = arith.constant 0 : i32
    %c0_i32_0 = arith.constant 0 : i32
    %c0_i32_1 = arith.constant 0 : i32
    return %c0_i32, %c0_i32_0 : i32, i32
  }
  func.func @transform_2(%arg0: i32) -> (i32, i32) {
    %c0_i32 = arith.constant 0 : i32
    %c0_i32_0 = arith.constant 0 : i32
    %c0_i32_1 = arith.constant 0 : i32
    return %c0_i32, %c0_i32_0 : i32, i32
  }
  func.func @transform_3(%arg0: i32) -> (i32, i32) {
    %c0_i32 = arith.constant 0 : i32
    %c0_i32_0 = arith.constant 0 : i32
    %c0_i32_1 = arith.constant 0 : i32
    return %c0_i32, %c0_i32_0 : i32, i32
  }
}

</mosaic_0001>

<bundles_post_ra>
// kernel: gp_model_forward.4
= control target key start
LH: loop header
LB: loop body
LE: loop exit
PB: predicated region body
PF: predicated region fallthrough
CT: control target
= control target key end

     0   :  { %v230_v0 = vmov 0   ;;  %vm81_vm0 = vcmask 261120   ;;  %vm200_vm1 = vcmask 7168   ;;  %s329_s4 = inlined_call_operand.vmem [shape: f32[32,1], index: 4, kind: input, shape index: {}, may-alias: {3,4}]   ;;  %s330_s3 = inlined_call_operand.vmem [shape: f32[32,1], index: 3, kind: input, shape index: {}, may-alias: {3,4}]   ;;  %s331_s0 = inlined_call_operand.vmem [shape: bf16[32,32], index: 0, kind: input, shape index: {}]   ;;  %s332_s1 = inlined_call_operand.vmem [shape: f32[32,128], index: 1, kind: input, shape index: {}, may-alias: {1,2}]   ;;  %s333_s2 = inlined_call_operand.vmem [shape: f32[32,128], index: 2, kind: input, shape index: {}, may-alias: {1,2}]   ;;  %s334_s5 = inlined_call_operand.vmem [shape: f32[32,1], index: 5, kind: output, shape index: {}]  }
   0x1   :  { %227 = vset.pattern.permute.xlu1 %v230_v0  ;;  %226 = vset.pattern.permute.xlu0 %v230_v0  ;;  %v35_v1 = vld [vmem:[%s329_s4 + $0x10] sm:$0xff]  ;;  %v33_v2 = vld [vmem:[%s329_s4] sm:$0xff]  ;;  %v36_v3 = vld [vmem:[%s329_s4 + $0x18] sm:$0xff] }
   0x2   :  { %49 = vperm.xlu1 %227, %v35_v1   ;;  %39 = vperm.xlu0 %226, %v33_v2   ;;  %v34_v4 = vld [vmem:[%s329_s4 + $0x8] sm:$0xff]  ;;  %v152_v6 = vld [vmem:[%s330_s3] sm:$0xff]  ;;  %v155_v7 = vld [vmem:[%s330_s3 + $0x18] sm:$0xff] }
   0x3   :  { %v153_v5 = vld [vmem:[%s330_s3 + $0x8] sm:$0xff]  ;;  %v154_v8 = vld [vmem:[%s330_s3 + $0x10] sm:$0xff]  ;;  %v228_v9 = vld [vmem:[%s331_s0] sm:$0xff]  }
   0x4   :  { %221 = vmatprep.mubr.msk.bf16.mxu0 %vm81_vm0, %v228_v9  ;;  %v31_v12 = vld [vmem:[%s332_s1 + $0x10] sm:$0xff]  ;;  %v29_v13 = vld [vmem:[%s332_s1] sm:$0xff]  ;;  %v32_v14 = vld [vmem:[%s332_s1 + $0x18] sm:$0xff] }
   0x5   :  { %v30_v15 = vld [vmem:[%s332_s1 + $0x8] sm:$0xff]  ;;  %v180_v30 = vld [vmem:[%s333_s2] sm:$0xff]  ;;  %v182_v36 = vld [vmem:[%s333_s2 + $0x10] sm:$0xff] }
   0x6   :  { %54 = vperm.xlu1 %227, %v36_v3   ;;  %44 = vperm.xlu0 %226, %v34_v4   ;;  %v229_v24 = vld [vmem:[%s331_s0 + $0x8] sm:$0xff]   ;;  %v183_v44 = vld [vmem:[%s333_s2 + $0x18] sm:$0xff] }
   0x7   :  { %v181_v35 = vld [vmem:[%s333_s2 + $0x8] sm:$0xff] }
   0xa   :  { %163 = vperm.xlu1 %227, %v153_v5   ;;  %158 = vperm.xlu0 %226, %v152_v6  }
   0xe   :  { %173 = vperm.xlu1 %227, %v155_v7   ;;  %168 = vperm.xlu0 %226, %v154_v8  }
  0x81   :  { %v50_v10 = vpop.permute.xlu1 %49  ;;  %v40_v11 = vpop.permute.xlu0 %39 }
  0x82   :  { %v59_v18 = vmul.f32 %v50_v10, %v31_v12  ;;  %v57_v19 = vmul.f32 %v40_v11, %v29_v13 }
  0x85   :  { %v55_v16 = vpop.permute.xlu1 %54  ;;  %v45_v17 = vpop.permute.xlu0 %44 }
  0x86   :  { %v60_v20 = vmul.f32 %v55_v16, %v32_v14  ;;  %v58_v21 = vmul.f32 %v45_v17, %v30_v15 }
  0x88   :  { %v61_v22 = vpack.c.bf16 %v58_v21, %v57_v19  ;;  %v62_v23 = vpack.c.bf16 %v60_v20, %v59_v18 }
  0x89   :  { %v159_v25 = vpop.permute.xlu0 %158  ;;  %v164_v26 = vpop.permute.xlu1 %163 }
  0x8a   :  { %217 = vmatprep.subr.bf16.mxu0 %v61_v22 }
  0x8b   :  { %218 = vmatpush3.bf16.msra.mxu0 %v61_v22 }
  0x8c   :  { %219 = vmatprep.subr.bf16.mxu0 %v62_v23 }
  0x8d   :  { %v169_v28 = vpop.permute.xlu0 %168  ;;  %v174_v39 = vpop.permute.xlu1 %173 }
  0x8f   :  { %220 = vmatpush3.bf16.msra.mxu0 %v62_v23 }
  0x92   :  { %222 = vmatmul.mubr.msk.bf16.vlgmr.msra.gmra.mrb[0].mxu0 %vm81_vm0, %v229_v24 }
 0x165   :  { %v223_v27 = vpop.f32.mrb[0].mxu0 }
 0x166   :  { %v122_v29 = vpop.f32.mrb[1].mxu0  ;;  %v178_v31 = vmul.f32 %v223_v27, %v169_v28 }
 0x167   :  { %v176_v32 = vmul.f32 %v159_v25, %v122_v29  ;;  %v224_v33 = vpop.f32.mrb[2].mxu0 }
 0x168   :  { %v125_v34 = vpop.f32.mrb[3].mxu0  ;;  %v179_v40 = vmul.f32 %v224_v33, %v174_v39  ;;  %v186_v43 = vsub.f32 %v182_v36, %v178_v31 }
 0x169   :  { %v177_v37 = vmul.f32 %v164_v26, %v125_v34  ;;  %v184_v38 = vsub.f32 %v180_v30, %v176_v32 }
 0x16a   :  { %v190_v46 = vand.u32 2147483647, %v186_v43  ;;  %v187_v47 = vsub.f32 %v183_v44, %v179_v40 }
 0x16b   :  { %v188_v41 = vand.u32 2147483647, %v184_v38  ;;  %v185_v42 = vsub.f32 %v181_v35, %v177_v37 }
 0x16c   :  { %v191_v48 = vand.u32 2147483647, %v187_v47 }
 0x16d   :  { %192 = vadd.xlane.f32.xlu0 %v188_v41  ;;  %v189_v45 = vand.u32 2147483647, %v185_v42 }
 0x16f   :  { %194 = vadd.xlane.f32.xlu1 %v189_v45 }
 0x171   :  { %196 = vadd.xlane.f32.xlu0 %v190_v46 }
 0x175   :  { %198 = vadd.xlane.f32.xlu0 %v191_v48 }
 0x1fa   :  { %v193_v49 = vpop.xlane.xlu0 %192 }
 0x1fb   :  { %201 = vst.msk [vmem:[%s334_s5] sm:$0xff] %vm200_vm1, %v193_v49 }
 0x1fc   :  { %v195_v50 = vpop.xlane.xlu1 %194 }
 0x1fd   :  { %202 = vst.msk [vmem:[%s334_s5 + $0x8] sm:$0xff] %vm200_vm1, %v195_v50 }
 0x1fe   :  { %v197_v51 = vpop.xlane.xlu0 %196 }
 0x1ff   :  { %203 = vst.msk [vmem:[%s334_s5 + $0x10] sm:$0xff] %vm200_vm1, %v197_v51 }
 0x202   :  { %v199_v52 = vpop.xlane.xlu0 %198 }
 0x203   :  { %204 = vst.msk [vmem:[%s334_s5 + $0x18] sm:$0xff] %vm200_vm1, %v199_v52 }

// kernel: gp_model_forward.7
= control target key start
LH: loop header
LB: loop body
LE: loop exit
PB: predicated region body
PF: predicated region fallthrough
CT: control target
= control target key end

     0   :  { %s459_s12 = smov 0   ;;  %s503_s0 = inlined_call_operand.vmem [shape: f32[3,2,32], index: 0, kind: input, shape index: {}]   ;;  %s504_s1 = inlined_call_operand.vmem [shape: f32[32,128], index: 1, kind: input, shape index: {}]   ;;  %s505_s2 = inlined_call_operand.vmem [shape: f32[2,128], index: 2, kind: output, shape index: {0}]   ;;  %s506_s3 = inlined_call_operand.vmem [shape: f32[2,128], index: 3, kind: output, shape index: {1}]  }
   0x1 LB: > { %s382_s13 = sadd.s32 4294967295, %s433_s12   ;;  %p385_p0 = scmp.ge.s32.totalorder %s433_s12, 1  ;;  %s433_s12 = sphi %s459_s12, %s14_s12  }
   0x2   : > { %p129_p1 = scmp.lt.s32.totalorder %s433_s12, 4 }
   0x4   : > { %p130_p2 = pnand %p385_p0, %p129_p1 }
   0x5   : > { %p147_p3 = scmp.lt.s32.totalorder (!%p130_p2), %s382_s13, 2  ;;  %p387_p4 = scmp.ne.s32.totalorder (!%p130_p2), %s382_s13, 0 }
   0x6   : > { %133 = sbr.rel (%p130_p2) target bundleno = 250 (0xfa), region = 28 }
   0xd   : > { %s148_s14 = scalar_select %p147_p3, %s382_s13, 2 }
   0xe   : > { %154 = sbr.rel (%p387_p4) target bundleno = 21 (0x15), region = 32  ;;  %v435_v0 = vmov (!%p387_p4), 0.0  }
   0xf   : > { %s386_s15 = sshll.u32 %s148_s14, 1  ;;  %155 = vst [vmem:[%s505_s2] sm:$0x3] (!%p387_p4), %v435_v0  ;;  %156 = vst [vmem:[%s506_s3] sm:$0x3] (!%p387_p4), %v435_v0 }
  0x10   : > { %s150_s18 = scalar_lea.vmem %s503_s0, %s386_s15 }
  0x15 PF: > { %v158_v1 = vld [vmem:[%s504_s1] sm:$0xff]  ;;  %v159_v2 = vld [vmem:[%s504_s1 + $0x8] sm:$0xff]  ;;  %v160_v3 = vld [vmem:[%s504_s1 + $0x10] sm:$0xff]  ;;  %v243_v4 = vlaneseq  ;;  %v436_v5 = vmov 0.0|0.0   ;;  %vm437_vm0 = vmmov 0   ;;  %v438_v8 = vmov 0.0  }
  0x16   : > { %407 = vmatprep.subr.bf16.mxu0 %v436_v5  ;;  %v408_v6 = vpack.c.bf16 %v159_v2, %v158_v1  ;;  %v161_v7 = vld [vmem:[%s504_s1 + $0x18] sm:$0xff]  ;;  %404 = vmatprep.mubr.msk.f32.mxu0 %vm437_vm0, %v438_v8  ;;  %v157_v9 = vld [vmem:[%s150_s18] sm:$0x3]  ;;  %vm236_vm1 = vcmask 254976   ;;  %vm162_vm2 = vcmask 261120   ;;  %vm336_vm11 = vcmask 1041409  }
  0x17   : > { %v237_v10 = vsel %vm236_vm1, %v157_v9, 0.0  ;;  %v244_v11 = vshrl.u32 %v243_v4, 7  ;;  %v411_v12 = vpack.c.bf16 %v161_v7, %v160_v3  ;;  %v340_v53 = vld [vmem:[%s505_s2] sm:$0x3] }
  0x18   : > { %409 = vmatpush3.bf16.msra.mxu0 %v408_v6  ;;  %238 = vadd.xlane.f32.xlu0 %v237_v10  ;;  %v344_v62 = vld [vmem:[%s506_s3] sm:$0x3] }
  0x19   : > { %410 = vmatprep.subr.bf16.mxu0 %v436_v5  ;;  %v245_v13 = vsub.s32 0, %v244_v11  ;;  %v264_v15 = vsub.s32 1, %v244_v11 }
  0x1b   : > { %v246_v14 = vrot.slane %v157_v9, %v245_v13  ;;  %v265_v16 = vrot.slane %v157_v9, %v264_v15 }
  0x1c   : > { %412 = vmatpush3.bf16.msra.mxu0 %v411_v12 }
  0x1d   : > { %252 = vbcast.lane.b32.xlu1 %v246_v14, 264 }
  0x1f   : > { %405 = vmatmul.mubr.msk.f32.vlgmr.msra.gmra.mrb[0].mxu0 %vm162_vm2, %v157_v9 }
  0x21   : > { %256 = vbcast.lane.b32.xlu1 %v246_v14, 272 }
  0x25   : > { %260 = vbcast.lane.b32.xlu1 %v246_v14, 280 }
  0x29   : > { %267 = vbcast.lane.b32.xlu1 %v265_v16, 256 }
  0x2d   : > { %271 = vbcast.lane.b32.xlu1 %v265_v16, 264 }
  0x2e   : > { %248 = vbcast.lane.b32.xlu0 %v246_v14, 256 }
  0x31   : > { %275 = vbcast.lane.b32.xlu1 %v265_v16, 272 }
  0x35   : > { %279 = vbcast.lane.b32.xlu1 %v265_v16, 280 }
  0x8f   : > { %v253_v17 = vpop.permute.xlu1 %252 }
  0x90   : > { %vm282_vm4 = vcmp.gt.f32.partialorder %v253_v17, 0.0 }
  0x91   : > { %v306_v26 = vsel %vm282_vm4, %v159_v2, -3e+38 }
  0x93   : > { %v257_v18 = vpop.permute.xlu1 %256 }
  0x94   : > { %vm283_vm8 = vcmp.gt.f32.partialorder %v257_v18, 0.0 }
  0x95   : > { %v307_v31 = vsel %vm283_vm8, %v160_v3, -3e+38 }
  0x97   : > { %v261_v19 = vpop.permute.xlu1 %260 }
  0x98   : > { %vm284_vm5 = vcmp.gt.f32.partialorder %v261_v19, 0.0 }
  0x99   : > { %v308_v27 = vsel %vm284_vm5, %v161_v7, -3e+38 }
  0x9a   : > { %v314_v34 = vmax.f32 %v306_v26, %v308_v27 }
  0x9b   : > { %v268_v20 = vpop.permute.xlu1 %267 }
  0x9c   : > { %vm285_vm3 = vcmp.gt.f32.partialorder %v268_v20, 0.0 }
  0x9d   : > { %v309_v23 = vsel %vm285_vm3, %v158_v1, -3e+38 }
  0x9f   : > { %v272_v21 = vpop.permute.xlu1 %271 }
  0xa0   : > { %vm286_vm6 = vcmp.gt.f32.partialorder %v272_v21, 0.0 }
  0xa1   : > { %v310_v28 = vsel %vm286_vm6, %v159_v2, -3e+38 }
  0xa3   : > { %v276_v22 = vpop.permute.xlu1 %275 }
  0xa4   : > { %vm287_vm7 = vcmp.gt.f32.partialorder %v276_v22, 0.0 }
  0xa5   : > { %v311_v24 = vsel %vm287_vm7, %v160_v3, -3e+38  ;;  %v239_v25 = vpop.xlane.xlu0 %238 }
  0xa6   : > { %v322_v30 = vmax.f32 %v309_v23, %v311_v24  ;;  %vm331_vm12 = vcmp.gt.f32.partialorder %v239_v25, 0.0  ;;  %v240_v57 = vmax.f32 %v239_v25, 1.0 }
  0xa7   : > { %v280_v29 = vpop.permute.xlu1 %279 }
  0xa8   : > { %vm288_vm9 = vcmp.gt.f32.partialorder %v280_v29, 0.0  ;;  %425 = vrcp.f32 %v240_v57 }
  0xa9   : > { %v312_v32 = vsel %vm288_vm9, %v161_v7, -3e+38  ;;  %v249_v33 = vpop.permute.xlu0 %248 }
  0xaa   : > { %v323_v35 = vmax.f32 %v310_v28, %v312_v32  ;;  %vm281_vm10 = vcmp.gt.f32.partialorder %v249_v33, 0.0 }
  0xab   : > { %v305_v36 = vsel %vm281_vm10, %v158_v1, -3e+38 }
  0xac   : > { %v324_v37 = vmax.f32 %v322_v30, %v323_v35  ;;  %v313_v38 = vmax.f32 %v305_v36, %v307_v31 }
  0xae   : > { %v325_v39 = vrot.slane %v324_v37, 4  ;;  %v315_v40 = vmax.f32 %v313_v38, %v314_v34 }
  0xb0   : > { %v326_v41 = vmax.f32 %v324_v37, %v325_v39  ;;  %v316_v42 = vrot.slane %v315_v40, 4 }
  0xb2   : > { %v327_v43 = vrot.slane %v326_v41, 2  ;;  %v317_v44 = vmax.f32 %v315_v40, %v316_v42  ;;  %v426_v58 = vpop.eup %425 }
  0xb4   : > { %v328_v45 = vmax.f32 %v326_v41, %v327_v43  ;;  %v318_v46 = vrot.slane %v317_v44, 2 }
  0xb6   : > { %v329_v47 = vrot.slane %v328_v45, 1  ;;  %v319_v48 = vmax.f32 %v317_v44, %v318_v46 }
  0xb8   : > { %v330_v49 = vmax.f32 %v328_v45, %v329_v47  ;;  %v320_v50 = vrot.slane %v319_v48, 1 }
  0xba   : > { %v321_v51 = vmax.f32 %v319_v48, %v320_v50 }
  0xbc   : > { %v337_v52 = vsel %vm336_vm11, %v330_v49, %v321_v51 }
  0xbd   : > { %v339_v54 = vsel %vm331_vm12, %v337_v52, 0.0 }
  0xbe   : > { %v341_v55 = vmax.f32 %v339_v54, 0.0 }
  0xc0   : > { %v342_v56 = vadd.f32 %v341_v55, %v340_v53 }
  0xc2   : > { %343 = vst [vmem:[%s505_s2] sm:$0x3] %v342_v56 }
  0xf2   : > { %v232_v59 = vpop.f32.mrb[0].mxu0 }
  0xf3   : > { %v242_v60 = vmul.f32 %v426_v58, %v232_v59  ;;  %v406_v61 = vpop.f32.mrb[1].mxu0 }
  0xf5   : > { %v345_v63 = vmax.f32 %v242_v60, 0.0 }
  0xf7   : > { %v346_v0 = vadd.f32 %v345_v63, %v344_v62 }
  0xf9   : > { %347 = vst [vmem:[%s506_s3] sm:$0x3] %v346_v0 }
  0xfa PF: > { %s14_s12 = sadd.s32 1, %s433_s12  }
  0xfb   : > { %p11_p5 = scmp.ge.s32.totalorder %s14_s12, 5  }
  0xfd   :  { %13 = sbr.rel (!%p11_p5) target bundleno = 1 (0x1), region = 66 }

</bundles_post_ra>
